<compile_context>
chip_gen: v7x
topology: tpu7x:2x2x1
jax: 0.10.0
libtpu: 0.0.40
codegen_flags: <defaults>
</compile_context>

<pallas_src>
import math

import jax
import jax.numpy as jnp
from jax.experimental import pallas as pl
from jax.experimental.pallas import tpu as pltpu


TOKENS_PER_BLOCK = 8  # sublane-aligned output tiles; raise for long sequences.


def embedding_pallas(ids_flat, table, tokens_per_block=TOKENS_PER_BLOCK):
    """ids_flat: (N,) int32 token ids (N % tokens_per_block == 0).
    table: (vocab, d_model) float embedding table (stays in HBM).
    Returns (N, d_model): table[ids] * sqrt(d_model).
    """
    N = ids_flat.shape[0]
    vocab, d_model = table.shape
    assert N % tokens_per_block == 0
    num_blocks = N // tokens_per_block
    # Static Python float -> lowered as an immediate, NOT a captured constant.
    scale = float(math.sqrt(d_model))

    def kernel(ids_ref, table_ref, o_ref, sems):
        # ids_ref  : SMEM (N,) int32          (scalar prefetch)
        # table_ref: HBM  (vocab, d_model)    (pl.ANY -> manual DMA)
        # o_ref    : VMEM (tokens_per_block, d_model) output tile (DMA target)
        # sems     : DMA semaphores, one per in-flight row copy
        base = pl.program_id(0) * tokens_per_block

        # Issue all row-gather DMAs for this token block directly into the
        # output tile, wait, then do a single in-place scale pass.
        copies = []
        for t in range(tokens_per_block):
            tok = ids_ref[base + t]
            cp = pltpu.make_async_copy(
                table_ref.at[pl.ds(tok, 1), :],
                o_ref.at[pl.ds(t, 1), :],
                sems.at[t],
            )
            cp.start()
            copies.append(cp)
        for cp in copies:
            cp.wait()

        o_ref[...] = o_ref[...] * scale

    return pl.pallas_call(
        kernel,
        out_shape=jax.ShapeDtypeStruct((N, d_model), table.dtype),
        grid_spec=pltpu.PrefetchScalarGridSpec(
            num_scalar_prefetch=1,
            grid=(num_blocks,),
            in_specs=[pl.BlockSpec(memory_space=pl.ANY)],  # table stays in HBM
            out_specs=pl.BlockSpec(
                (tokens_per_block, d_model), lambda i, ids: (i, 0)
            ),
            scratch_shapes=[
                pltpu.SemaphoreType.DMA((tokens_per_block,)),
            ],
        ),
        compiler_params=pltpu.CompilerParams(
            dimension_semantics=("parallel",),
        ),
    )(ids_flat, table)


def embeddings_forward(x_ids, table, tokens_per_block=TOKENS_PER_BLOCK):
    """x_ids: integer token ids of any shape (e.g. (B, T)).
    Returns embeddings of shape (*x_ids.shape, d_model), scaled by sqrt(d_model).
    """
    d_model = table.shape[1]
    orig_shape = x_ids.shape
    ids_flat = x_ids.reshape(-1).astype(jnp.int32)
    n = ids_flat.shape[0]

    pad = (-n) % tokens_per_block
    if pad:
        ids_flat = jnp.concatenate(
            [ids_flat, jnp.zeros((pad,), jnp.int32)], axis=0
        )

    out = embedding_pallas(ids_flat, table, tokens_per_block)
    out = out[:n]
    return out.reshape(*orig_shape, d_model)


# TODO(synk): torch nn.Embedding options (padding_idx zeroing, max_norm renorm,
# sparse gradients) are not used by this module's forward and are not implemented.


if __name__ == "__main__":
    B, T, VOCAB, D_MODEL = 2, 8, 64, 32

    key = jax.random.PRNGKey(0)
    k_ids, k_tab = jax.random.split(key)

    x = jax.random.randint(k_ids, (B, T), 0, VOCAB, dtype=jnp.int32)
    # Matches torch's nn.Embedding default init (N(0, 1)); exact init is
    # irrelevant to kernel semantics.
    table = jax.random.normal(k_tab, (VOCAB, D_MODEL), jnp.float32)

    out = embeddings_forward(x, table)
    out = jax.block_until_ready(out)

    # Reference check: plain-JAX gather * sqrt(d_model).
    ref = table[x] * jnp.float32(math.sqrt(D_MODEL))

    assert out.shape == (B, T, D_MODEL)
    assert jnp.all(jnp.isfinite(out))
    assert jnp.allclose(out, ref, rtol=1e-6, atol=1e-6)
    print("KERNEL_OK")
</pallas_src>

<mosaic_0001>
module attributes {stable_mosaic.version = 11 : i64} {
  func.func @kernel(%arg0: i32, %arg1: memref<16xi32, #tpu.memory_space<smem>>, %arg2: memref<64x32xf32, #tpu.memory_space<any>>, %arg3: memref<8x32xf32, #tpu.memory_space<vmem>>, %arg4: memref<8x!tpu.dma_semaphore, #tpu.memory_space<semaphore_mem>>) attributes {dimension_semantics = [#tpu.dimension_semantics<parallel>], iteration_bounds = array<i64: 2>, scalar_prefetch = 1 : i64, scratch_operands = 1 : i64, tpu.core_type = #tpu.core_type<tc>, window_params = [{}, {transform_indices = @transform_1, window_bounds = array<i64: 8, 32>}]} {
    %c8_i32 = arith.constant 8 : i32
    %0 = arith.muli %arg0, %c8_i32 : i32
    %c0_i32 = arith.constant 0 : i32
    %1 = arith.addi %0, %c0_i32 : i32
    %2 = arith.index_cast %1 : i32 to index
    %3 = memref.load %arg1[%2] : memref<16xi32, #tpu.memory_space<smem>>
    %c0_i32_0 = arith.constant 0 : i32
    %c0_i32_1 = arith.constant 0 : i32
    %4 = tpu.memref_slice %arg2[%3, %c0_i32_1] : memref<64x32xf32, #tpu.memory_space<any>> -> memref<1x32xf32, #tpu.memory_space<any>>
    %c0_i32_2 = arith.constant 0 : i32
    %c0_i32_3 = arith.constant 0 : i32
    %5 = tpu.memref_slice %arg3[%c0_i32_2, %c0_i32_3] : memref<8x32xf32, #tpu.memory_space<vmem>> -> memref<1x32xf32, #tpu.memory_space<vmem>>
    %6 = tpu.memref_slice %arg4[%c0_i32_0] : memref<8x!tpu.dma_semaphore, #tpu.memory_space<semaphore_mem>> -> memref<1x!tpu.dma_semaphore, #tpu.memory_space<semaphore_mem>>
    %7 = tpu.memref_squeeze %6 : memref<1x!tpu.dma_semaphore, #tpu.memory_space<semaphore_mem>> -> memref<!tpu.dma_semaphore, #tpu.memory_space<semaphore_mem>>
    tpu.enqueue_dma source(%4 : memref<1x32xf32, #tpu.memory_space<any>>) target(%5 : memref<1x32xf32, #tpu.memory_space<vmem>>) target_semaphore(%7 : memref<!tpu.dma_semaphore, #tpu.memory_space<semaphore_mem>>)
    %c1_i32 = arith.constant 1 : i32
    %8 = arith.addi %0, %c1_i32 : i32
    %9 = arith.index_cast %8 : i32 to index
    %10 = memref.load %arg1[%9] : memref<16xi32, #tpu.memory_space<smem>>
    %c1_i32_4 = arith.constant 1 : i32
    %c0_i32_5 = arith.constant 0 : i32
    %11 = tpu.memref_slice %arg2[%10, %c0_i32_5] : memref<64x32xf32, #tpu.memory_space<any>> -> memref<1x32xf32, #tpu.memory_space<any>>
    %c1_i32_6 = arith.constant 1 : i32
    %c0_i32_7 = arith.constant 0 : i32
    %12 = tpu.memref_slice %arg3[%c1_i32_6, %c0_i32_7] : memref<8x32xf32, #tpu.memory_space<vmem>> -> memref<1x32xf32, #tpu.memory_space<vmem>>
    %13 = tpu.memref_slice %arg4[%c1_i32_4] : memref<8x!tpu.dma_semaphore, #tpu.memory_space<semaphore_mem>> -> memref<1x!tpu.dma_semaphore, #tpu.memory_space<semaphore_mem>>
    %14 = tpu.memref_squeeze %13 : memref<1x!tpu.dma_semaphore, #tpu.memory_space<semaphore_mem>> -> memref<!tpu.dma_semaphore, #tpu.memory_space<semaphore_mem>>
    tpu.enqueue_dma source(%11 : memref<1x32xf32, #tpu.memory_space<any>>) target(%12 : memref<1x32xf32, #tpu.memory_space<vmem>>) target_semaphore(%14 : memref<!tpu.dma_semaphore, #tpu.memory_space<semaphore_mem>>)
    %c2_i32 = arith.constant 2 : i32
    %15 = arith.addi %0, %c2_i32 : i32
    %16 = arith.index_cast %15 : i32 to index
    %17 = memref.load %arg1[%16] : memref<16xi32, #tpu.memory_space<smem>>
    %c2_i32_8 = arith.constant 2 : i32
    %c0_i32_9 = arith.constant 0 : i32
    %18 = tpu.memref_slice %arg2[%17, %c0_i32_9] : memref<64x32xf32, #tpu.memory_space<any>> -> memref<1x32xf32, #tpu.memory_space<any>>
    %c2_i32_10 = arith.constant 2 : i32
    %c0_i32_11 = arith.constant 0 : i32
    %19 = tpu.memref_slice %arg3[%c2_i32_10, %c0_i32_11] : memref<8x32xf32, #tpu.memory_space<vmem>> -> memref<1x32xf32, #tpu.memory_space<vmem>>
    %20 = tpu.memref_slice %arg4[%c2_i32_8] : memref<8x!tpu.dma_semaphore, #tpu.memory_space<semaphore_mem>> -> memref<1x!tpu.dma_semaphore, #tpu.memory_space<semaphore_mem>>
    %21 = tpu.memref_squeeze %20 : memref<1x!tpu.dma_semaphore, #tpu.memory_space<semaphore_mem>> -> memref<!tpu.dma_semaphore, #tpu.memory_space<semaphore_mem>>
    tpu.enqueue_dma source(%18 : memref<1x32xf32, #tpu.memory_space<any>>) target(%19 : memref<1x32xf32, #tpu.memory_space<vmem>>) target_semaphore(%21 : memref<!tpu.dma_semaphore, #tpu.memory_space<semaphore_mem>>)
    %c3_i32 = arith.constant 3 : i32
    %22 = arith.addi %0, %c3_i32 : i32
    %23 = arith.index_cast %22 : i32 to index
    %24 = memref.load %arg1[%23] : memref<16xi32, #tpu.memory_space<smem>>
    %c3_i32_12 = arith.constant 3 : i32
    %c0_i32_13 = arith.constant 0 : i32
    %25 = tpu.memref_slice %arg2[%24, %c0_i32_13] : memref<64x32xf32, #tpu.memory_space<any>> -> memref<1x32xf32, #tpu.memory_space<any>>
    %c3_i32_14 = arith.constant 3 : i32
    %c0_i32_15 = arith.constant 0 : i32
    %26 = tpu.memref_slice %arg3[%c3_i32_14, %c0_i32_15] : memref<8x32xf32, #tpu.memory_space<vmem>> -> memref<1x32xf32, #tpu.memory_space<vmem>>
    %27 = tpu.memref_slice %arg4[%c3_i32_12] : memref<8x!tpu.dma_semaphore, #tpu.memory_space<semaphore_mem>> -> memref<1x!tpu.dma_semaphore, #tpu.memory_space<semaphore_mem>>
    %28 = tpu.memref_squeeze %27 : memref<1x!tpu.dma_semaphore, #tpu.memory_space<semaphore_mem>> -> memref<!tpu.dma_semaphore, #tpu.memory_space<semaphore_mem>>
    tpu.enqueue_dma source(%25 : memref<1x32xf32, #tpu.memory_space<any>>) target(%26 : memref<1x32xf32, #tpu.memory_space<vmem>>) target_semaphore(%28 : memref<!tpu.dma_semaphore, #tpu.memory_space<semaphore_mem>>)
    %c4_i32 = arith.constant 4 : i32
    %29 = arith.addi %0, %c4_i32 : i32
    %30 = arith.index_cast %29 : i32 to index
    %31 = memref.load %arg1[%30] : memref<16xi32, #tpu.memory_space<smem>>
    %c4_i32_16 = arith.constant 4 : i32
    %c0_i32_17 = arith.constant 0 : i32
    %32 = tpu.memref_slice %arg2[%31, %c0_i32_17] : memref<64x32xf32, #tpu.memory_space<any>> -> memref<1x32xf32, #tpu.memory_space<any>>
    %c4_i32_18 = arith.constant 4 : i32
    %c0_i32_19 = arith.constant 0 : i32
    %33 = tpu.memref_slice %arg3[%c4_i32_18, %c0_i32_19] : memref<8x32xf32, #tpu.memory_space<vmem>> -> memref<1x32xf32, #tpu.memory_space<vmem>>
    %34 = tpu.memref_slice %arg4[%c4_i32_16] : memref<8x!tpu.dma_semaphore, #tpu.memory_space<semaphore_mem>> -> memref<1x!tpu.dma_semaphore, #tpu.memory_space<semaphore_mem>>
    %35 = tpu.memref_squeeze %34 : memref<1x!tpu.dma_semaphore, #tpu.memory_space<semaphore_mem>> -> memref<!tpu.dma_semaphore, #tpu.memory_space<semaphore_mem>>
    tpu.enqueue_dma source(%32 : memref<1x32xf32, #tpu.memory_space<any>>) target(%33 : memref<1x32xf32, #tpu.memory_space<vmem>>) target_semaphore(%35 : memref<!tpu.dma_semaphore, #tpu.memory_space<semaphore_mem>>)
    %c5_i32 = arith.constant 5 : i32
    %36 = arith.addi %0, %c5_i32 : i32
    %37 = arith.index_cast %36 : i32 to index
    %38 = memref.load %arg1[%37] : memref<16xi32, #tpu.memory_space<smem>>
    %c5_i32_20 = arith.constant 5 : i32
    %c0_i32_21 = arith.constant 0 : i32
    %39 = tpu.memref_slice %arg2[%38, %c0_i32_21] : memref<64x32xf32, #tpu.memory_space<any>> -> memref<1x32xf32, #tpu.memory_space<any>>
    %c5_i32_22 = arith.constant 5 : i32
    %c0_i32_23 = arith.constant 0 : i32
    %40 = tpu.memref_slice %arg3[%c5_i32_22, %c0_i32_23] : memref<8x32xf32, #tpu.memory_space<vmem>> -> memref<1x32xf32, #tpu.memory_space<vmem>>
    %41 = tpu.memref_slice %arg4[%c5_i32_20] : memref<8x!tpu.dma_semaphore, #tpu.memory_space<semaphore_mem>> -> memref<1x!tpu.dma_semaphore, #tpu.memory_space<semaphore_mem>>
    %42 = tpu.memref_squeeze %41 : memref<1x!tpu.dma_semaphore, #tpu.memory_space<semaphore_mem>> -> memref<!tpu.dma_semaphore, #tpu.memory_space<semaphore_mem>>
    tpu.enqueue_dma source(%39 : memref<1x32xf32, #tpu.memory_space<any>>) target(%40 : memref<1x32xf32, #tpu.memory_space<vmem>>) target_semaphore(%42 : memref<!tpu.dma_semaphore, #tpu.memory_space<semaphore_mem>>)
    %c6_i32 = arith.constant 6 : i32
    %43 = arith.addi %0, %c6_i32 : i32
    %44 = arith.index_cast %43 : i32 to index
    %45 = memref.load %arg1[%44] : memref<16xi32, #tpu.memory_space<smem>>
    %c6_i32_24 = arith.constant 6 : i32
    %c0_i32_25 = arith.constant 0 : i32
    %46 = tpu.memref_slice %arg2[%45, %c0_i32_25] : memref<64x32xf32, #tpu.memory_space<any>> -> memref<1x32xf32, #tpu.memory_space<any>>
    %c6_i32_26 = arith.constant 6 : i32
    %c0_i32_27 = arith.constant 0 : i32
    %47 = tpu.memref_slice %arg3[%c6_i32_26, %c0_i32_27] : memref<8x32xf32, #tpu.memory_space<vmem>> -> memref<1x32xf32, #tpu.memory_space<vmem>>
    %48 = tpu.memref_slice %arg4[%c6_i32_24] : memref<8x!tpu.dma_semaphore, #tpu.memory_space<semaphore_mem>> -> memref<1x!tpu.dma_semaphore, #tpu.memory_space<semaphore_mem>>
    %49 = tpu.memref_squeeze %48 : memref<1x!tpu.dma_semaphore, #tpu.memory_space<semaphore_mem>> -> memref<!tpu.dma_semaphore, #tpu.memory_space<semaphore_mem>>
    tpu.enqueue_dma source(%46 : memref<1x32xf32, #tpu.memory_space<any>>) target(%47 : memref<1x32xf32, #tpu.memory_space<vmem>>) target_semaphore(%49 : memref<!tpu.dma_semaphore, #tpu.memory_space<semaphore_mem>>)
    %c7_i32 = arith.constant 7 : i32
    %50 = arith.addi %0, %c7_i32 : i32
    %51 = arith.index_cast %50 : i32 to index
    %52 = memref.load %arg1[%51] : memref<16xi32, #tpu.memory_space<smem>>
    %c7_i32_28 = arith.constant 7 : i32
    %c0_i32_29 = arith.constant 0 : i32
    %53 = tpu.memref_slice %arg2[%52, %c0_i32_29] : memref<64x32xf32, #tpu.memory_space<any>> -> memref<1x32xf32, #tpu.memory_space<any>>
    %c7_i32_30 = arith.constant 7 : i32
    %c0_i32_31 = arith.constant 0 : i32
    %54 = tpu.memref_slice %arg3[%c7_i32_30, %c0_i32_31] : memref<8x32xf32, #tpu.memory_space<vmem>> -> memref<1x32xf32, #tpu.memory_space<vmem>>
    %55 = tpu.memref_slice %arg4[%c7_i32_28] : memref<8x!tpu.dma_semaphore, #tpu.memory_space<semaphore_mem>> -> memref<1x!tpu.dma_semaphore, #tpu.memory_space<semaphore_mem>>
    %56 = tpu.memref_squeeze %55 : memref<1x!tpu.dma_semaphore, #tpu.memory_space<semaphore_mem>> -> memref<!tpu.dma_semaphore, #tpu.memory_space<semaphore_mem>>
    tpu.enqueue_dma source(%53 : memref<1x32xf32, #tpu.memory_space<any>>) target(%54 : memref<1x32xf32, #tpu.memory_space<vmem>>) target_semaphore(%56 : memref<!tpu.dma_semaphore, #tpu.memory_space<semaphore_mem>>)
    %c0_i32_32 = arith.constant 0 : i32
    %c0_i32_33 = arith.constant 0 : i32
    %57 = tpu.memref_slice %arg2[%3, %c0_i32_33] : memref<64x32xf32, #tpu.memory_space<any>> -> memref<1x32xf32, #tpu.memory_space<any>>
    %c0_i32_34 = arith.constant 0 : i32
    %c0_i32_35 = arith.constant 0 : i32
    %58 = tpu.memref_slice %arg3[%c0_i32_34, %c0_i32_35] : memref<8x32xf32, #tpu.memory_space<vmem>> -> memref<1x32xf32, #tpu.memory_space<vmem>>
    %59 = tpu.memref_slice %arg4[%c0_i32_32] : memref<8x!tpu.dma_semaphore, #tpu.memory_space<semaphore_mem>> -> memref<1x!tpu.dma_semaphore, #tpu.memory_space<semaphore_mem>>
    %60 = tpu.memref_squeeze %59 : memref<1x!tpu.dma_semaphore, #tpu.memory_space<semaphore_mem>> -> memref<!tpu.dma_semaphore, #tpu.memory_space<semaphore_mem>>
    tpu.wait_dma2 semaphore(%60 : memref<!tpu.dma_semaphore, #tpu.memory_space<semaphore_mem>>) src(%57 : memref<1x32xf32, #tpu.memory_space<any>>) dst(%58 : memref<1x32xf32, #tpu.memory_space<vmem>>)
    %c1_i32_36 = arith.constant 1 : i32
    %c0_i32_37 = arith.constant 0 : i32
    %61 = tpu.memref_slice %arg2[%10, %c0_i32_37] : memref<64x32xf32, #tpu.memory_space<any>> -> memref<1x32xf32, #tpu.memory_space<any>>
    %c1_i32_38 = arith.constant 1 : i32
    %c0_i32_39 = arith.constant 0 : i32
    %62 = tpu.memref_slice %arg3[%c1_i32_38, %c0_i32_39] : memref<8x32xf32, #tpu.memory_space<vmem>> -> memref<1x32xf32, #tpu.memory_space<vmem>>
    %63 = tpu.memref_slice %arg4[%c1_i32_36] : memref<8x!tpu.dma_semaphore, #tpu.memory_space<semaphore_mem>> -> memref<1x!tpu.dma_semaphore, #tpu.memory_space<semaphore_mem>>
    %64 = tpu.memref_squeeze %63 : memref<1x!tpu.dma_semaphore, #tpu.memory_space<semaphore_mem>> -> memref<!tpu.dma_semaphore, #tpu.memory_space<semaphore_mem>>
    tpu.wait_dma2 semaphore(%64 : memref<!tpu.dma_semaphore, #tpu.memory_space<semaphore_mem>>) src(%61 : memref<1x32xf32, #tpu.memory_space<any>>) dst(%62 : memref<1x32xf32, #tpu.memory_space<vmem>>)
    %c2_i32_40 = arith.constant 2 : i32
    %c0_i32_41 = arith.constant 0 : i32
    %65 = tpu.memref_slice %arg2[%17, %c0_i32_41] : memref<64x32xf32, #tpu.memory_space<any>> -> memref<1x32xf32, #tpu.memory_space<any>>
    %c2_i32_42 = arith.constant 2 : i32
    %c0_i32_43 = arith.constant 0 : i32
    %66 = tpu.memref_slice %arg3[%c2_i32_42, %c0_i32_43] : memref<8x32xf32, #tpu.memory_space<vmem>> -> memref<1x32xf32, #tpu.memory_space<vmem>>
    %67 = tpu.memref_slice %arg4[%c2_i32_40] : memref<8x!tpu.dma_semaphore, #tpu.memory_space<semaphore_mem>> -> memref<1x!tpu.dma_semaphore, #tpu.memory_space<semaphore_mem>>
    %68 = tpu.memref_squeeze %67 : memref<1x!tpu.dma_semaphore, #tpu.memory_space<semaphore_mem>> -> memref<!tpu.dma_semaphore, #tpu.memory_space<semaphore_mem>>
    tpu.wait_dma2 semaphore(%68 : memref<!tpu.dma_semaphore, #tpu.memory_space<semaphore_mem>>) src(%65 : memref<1x32xf32, #tpu.memory_space<any>>) dst(%66 : memref<1x32xf32, #tpu.memory_space<vmem>>)
    %c3_i32_44 = arith.constant 3 : i32
    %c0_i32_45 = arith.constant 0 : i32
    %69 = tpu.memref_slice %arg2[%24, %c0_i32_45] : memref<64x32xf32, #tpu.memory_space<any>> -> memref<1x32xf32, #tpu.memory_space<any>>
    %c3_i32_46 = arith.constant 3 : i32
    %c0_i32_47 = arith.constant 0 : i32
    %70 = tpu.memref_slice %arg3[%c3_i32_46, %c0_i32_47] : memref<8x32xf32, #tpu.memory_space<vmem>> -> memref<1x32xf32, #tpu.memory_space<vmem>>
    %71 = tpu.memref_slice %arg4[%c3_i32_44] : memref<8x!tpu.dma_semaphore, #tpu.memory_space<semaphore_mem>> -> memref<1x!tpu.dma_semaphore, #tpu.memory_space<semaphore_mem>>
    %72 = tpu.memref_squeeze %71 : memref<1x!tpu.dma_semaphore, #tpu.memory_space<semaphore_mem>> -> memref<!tpu.dma_semaphore, #tpu.memory_space<semaphore_mem>>
    tpu.wait_dma2 semaphore(%72 : memref<!tpu.dma_semaphore, #tpu.memory_space<semaphore_mem>>) src(%69 : memref<1x32xf32, #tpu.memory_space<any>>) dst(%70 : memref<1x32xf32, #tpu.memory_space<vmem>>)
    %c4_i32_48 = arith.constant 4 : i32
    %c0_i32_49 = arith.constant 0 : i32
    %73 = tpu.memref_slice %arg2[%31, %c0_i32_49] : memref<64x32xf32, #tpu.memory_space<any>> -> memref<1x32xf32, #tpu.memory_space<any>>
    %c4_i32_50 = arith.constant 4 : i32
    %c0_i32_51 = arith.constant 0 : i32
    %74 = tpu.memref_slice %arg3[%c4_i32_50, %c0_i32_51] : memref<8x32xf32, #tpu.memory_space<vmem>> -> memref<1x32xf32, #tpu.memory_space<vmem>>
    %75 = tpu.memref_slice %arg4[%c4_i32_48] : memref<8x!tpu.dma_semaphore, #tpu.memory_space<semaphore_mem>> -> memref<1x!tpu.dma_semaphore, #tpu.memory_space<semaphore_mem>>
    %76 = tpu.memref_squeeze %75 : memref<1x!tpu.dma_semaphore, #tpu.memory_space<semaphore_mem>> -> memref<!tpu.dma_semaphore, #tpu.memory_space<semaphore_mem>>
    tpu.wait_dma2 semaphore(%76 : memref<!tpu.dma_semaphore, #tpu.memory_space<semaphore_mem>>) src(%73 : memref<1x32xf32, #tpu.memory_space<any>>) dst(%74 : memref<1x32xf32, #tpu.memory_space<vmem>>)
    %c5_i32_52 = arith.constant 5 : i32
    %c0_i32_53 = arith.constant 0 : i32
    %77 = tpu.memref_slice %arg2[%38, %c0_i32_53] : memref<64x32xf32, #tpu.memory_space<any>> -> memref<1x32xf32, #tpu.memory_space<any>>
    %c5_i32_54 = arith.constant 5 : i32
    %c0_i32_55 = arith.constant 0 : i32
    %78 = tpu.memref_slice %arg3[%c5_i32_54, %c0_i32_55] : memref<8x32xf32, #tpu.memory_space<vmem>> -> memref<1x32xf32, #tpu.memory_space<vmem>>
    %79 = tpu.memref_slice %arg4[%c5_i32_52] : memref<8x!tpu.dma_semaphore, #tpu.memory_space<semaphore_mem>> -> memref<1x!tpu.dma_semaphore, #tpu.memory_space<semaphore_mem>>
    %80 = tpu.memref_squeeze %79 : memref<1x!tpu.dma_semaphore, #tpu.memory_space<semaphore_mem>> -> memref<!tpu.dma_semaphore, #tpu.memory_space<semaphore_mem>>
    tpu.wait_dma2 semaphore(%80 : memref<!tpu.dma_semaphore, #tpu.memory_space<semaphore_mem>>) src(%77 : memref<1x32xf32, #tpu.memory_space<any>>) dst(%78 : memref<1x32xf32, #tpu.memory_space<vmem>>)
    %c6_i32_56 = arith.constant 6 : i32
    %c0_i32_57 = arith.constant 0 : i32
    %81 = tpu.memref_slice %arg2[%45, %c0_i32_57] : memref<64x32xf32, #tpu.memory_space<any>> -> memref<1x32xf32, #tpu.memory_space<any>>
    %c6_i32_58 = arith.constant 6 : i32
    %c0_i32_59 = arith.constant 0 : i32
    %82 = tpu.memref_slice %arg3[%c6_i32_58, %c0_i32_59] : memref<8x32xf32, #tpu.memory_space<vmem>> -> memref<1x32xf32, #tpu.memory_space<vmem>>
    %83 = tpu.memref_slice %arg4[%c6_i32_56] : memref<8x!tpu.dma_semaphore, #tpu.memory_space<semaphore_mem>> -> memref<1x!tpu.dma_semaphore, #tpu.memory_space<semaphore_mem>>
    %84 = tpu.memref_squeeze %83 : memref<1x!tpu.dma_semaphore, #tpu.memory_space<semaphore_mem>> -> memref<!tpu.dma_semaphore, #tpu.memory_space<semaphore_mem>>
    tpu.wait_dma2 semaphore(%84 : memref<!tpu.dma_semaphore, #tpu.memory_space<semaphore_mem>>) src(%81 : memref<1x32xf32, #tpu.memory_space<any>>) dst(%82 : memref<1x32xf32, #tpu.memory_space<vmem>>)
    %c7_i32_60 = arith.constant 7 : i32
    %c0_i32_61 = arith.constant 0 : i32
    %85 = tpu.memref_slice %arg2[%52, %c0_i32_61] : memref<64x32xf32, #tpu.memory_space<any>> -> memref<1x32xf32, #tpu.memory_space<any>>
    %c7_i32_62 = arith.constant 7 : i32
    %c0_i32_63 = arith.constant 0 : i32
    %86 = tpu.memref_slice %arg3[%c7_i32_62, %c0_i32_63] : memref<8x32xf32, #tpu.memory_space<vmem>> -> memref<1x32xf32, #tpu.memory_space<vmem>>
    %87 = tpu.memref_slice %arg4[%c7_i32_60] : memref<8x!tpu.dma_semaphore, #tpu.memory_space<semaphore_mem>> -> memref<1x!tpu.dma_semaphore, #tpu.memory_space<semaphore_mem>>
    %88 = tpu.memref_squeeze %87 : memref<1x!tpu.dma_semaphore, #tpu.memory_space<semaphore_mem>> -> memref<!tpu.dma_semaphore, #tpu.memory_space<semaphore_mem>>
    tpu.wait_dma2 semaphore(%88 : memref<!tpu.dma_semaphore, #tpu.memory_space<semaphore_mem>>) src(%85 : memref<1x32xf32, #tpu.memory_space<any>>) dst(%86 : memref<1x32xf32, #tpu.memory_space<vmem>>)
    %c0 = arith.constant 0 : index
    %c0_64 = arith.constant 0 : index
    %89 = vector.load %arg3[%c0, %c0_64] : memref<8x32xf32, #tpu.memory_space<vmem>>, vector<8x32xf32>
    %cst = arith.constant 5.65685415 : f32
    %90 = vector.broadcast %cst : f32 to vector<8x32xf32>
    %91 = arith.mulf %89, %90 : vector<8x32xf32>
    %c0_65 = arith.constant 0 : index
    %c0_66 = arith.constant 0 : index
    %92 = vector.load %arg3[%c0_65, %c0_66] : memref<8x32xf32, #tpu.memory_space<vmem>>, vector<8x32xf32>
    tpu.vector_store %arg3[%c0_65, %c0_66], %91 {strides = array<i32>} : memref<8x32xf32, #tpu.memory_space<vmem>>, vector<8x32xf32>,
    return
  }
  func.func @transform_1(%arg0: i32, %arg1: memref<16xi32, #tpu.memory_space<smem>>) -> (i32, i32) {
    %c0_i32 = arith.constant 0 : i32
    %c0_i32_0 = arith.constant 0 : i32
    return %arg0, %c0_i32 : i32, i32
  }
}

</mosaic_0001>

<bundles_post_ra>
// kernel: tpu_custom_call.1
= control target key start
LH: loop header
LB: loop body
LE: loop exit
PB: predicated region body
PF: predicated region fallthrough
CT: control target
= control target key end

     0   :  { %s974_s0 = inlined_call_operand.vmem [shape: s32[16], index: 0, kind: input, shape index: {}]   ;;  %s975_s1 = inlined_call_operand.vmem [shape: f32[64,32], index: 1, kind: input, shape index: {}]   ;;  %s976_s2 = inlined_call_operand.hbm [shape: f32[16,32], index: 2, kind: output, shape index: {}]  }
   0x1   :  { %s7_s11 = sshll.u32 %s974_s0, 4  ;;  %s8_s11 = int_to_ptr.vmem [resolvable:$true] %s7_s11 }
   0x2   :  { %s735_s12 = scalar_lea.vmem %s8_s11, 16  ;;  %p740_p1 = scmp.lt.s32.totalorder %s8_s11, %s8_s11 }
   0x3   :  { %p736_p0 = scmp.ne.s32.totalorder %s8_s11, %s735_s12  ;;  %p741_p2 = scmp.lt.s32.totalorder %s735_s12, %s735_s12 }
   0x5   :  { %p742_p3 = por %p741_p2, %p740_p1 }
   0x7   :  { %p743_p4 = pnand %p742_p3, %p736_p0 }
   0x9   :  { %746 = shalt.err (!%p743_p4)  }
   0xa   :  { %s821_s13 = smov [#allocation4]  }
   0xb   :  { %10 = dma.vmem_to_smem %s8_s11, 16, %s821_s13, [#allocation3] }
   0xc   :  { %787 = dma.done.wait [#allocation3], 16 }
   0xd   :  { %788 = vsyncadd [#allocation3], 4294967280 }
   0xe   :  { %12 = sfence }
   0xf   :  { %13 = vsyncpa [#allocation6], 0 }
  0x10   :  { %15 = vsyncpa [#allocation6 + $0x1], 0  ;;  %s841_s14 = smov 0   ;;  %s843_s15 = smov 0  }
  0x11   :  { %s845_s0 = smov 0  }
  0x12 LB: > { %s672_s16 = sadd.s32 4294967295, %s819_s0   ;;  %s858_s17 = sadd.s32 1, %s819_s0   ;;  %s819_s0 = sphi %s845_s0, %s981_s0   ;;  %s815_s15 = sphi %s843_s15, %s980_s15   ;;  %s811_s14 = sphi %s841_s14, %s979_s14  }
  0x13   : > { %s24_s18 = ssub.s32 %s819_s0, %s858_s17  ;;  %s27_s19 = sadd.s32 1, %s815_s15 }
  0x14   : > { %p25_p5 = scmp.eq.s32.totalorder %s24_s18, 0  ;;  %p673_p6 = scmp.ne.s32.totalorder %s24_s18, 0 }
  0x15   : > { %p31_p7 = scmp.eq.s32.totalorder %s819_s0, 1  ;;  %p36_p8 = scmp.ne.s32.totalorder %s815_s15, %s811_s14 }
  0x16   : > { %s867_s20 = scalar_select %p25_p5, %s815_s15, %s27_s19  }
  0x17   : > { %p869_p9 = por %p673_p6, %p31_p7  ;;  %p37_p10 = scmp.eq.s32.totalorder %s672_s16, 1 }
  0x18   : > { %p674_p12 = scmp.ge.s32.totalorder %s819_s0, 2 }
  0x19   : > { %p873_p11 = por %p37_p10, %p36_p8  ;;  %s51_s23 = sand.u32 (!%p674_p12), 1, %s815_s15  }
  0x1a   : > { %46 = sbr.rel (%p674_p12) target bundleno = 146 (0x92), region = 12  ;;  %s880_s24 = sshll.u32 (!%p674_p12), %s819_s0, 3 }
  0x1b   : > { %s55_s25 = sld [smem:[#allocation4 + %s880_s24]] (!%p674_p12)  ;;  %s675_s26 = sshll.u32 (!%p674_p12), %s51_s23, 3 }
  0x1c   : > { %s888_s30 = scalar_lea.vmem (!%p674_p12), [#allocation5], %s675_s26 }
  0x21   : > { %s56_s29 = scalar_lea.vmem %s975_s1, %s55_s25 }
  0x22   : > { %v74_v0 = vld [vmem:[%s56_s29] sm:$0x1] }
  0x23   : > { %75 = vst [vmem:[%s888_s30] sm:$0x1] %v74_v0 }
  0x24   : > { %100 = vsyncadd [#allocation2], 16  ;;  %s101_s3 = sadd.s32 1, %s880_s24 }
  0x25   : > { %s102_s4 = sld [smem:[#allocation4 + %s101_s3]] }
  0x2b   : > { %s103_s7 = scalar_lea.vmem %s975_s1, %s102_s4 }
  0x2c   : > { %v123_v1 = vld [vmem:[%s103_s7] sm:$0x1] }
  0x2d   : > { %678 = vst [vmem:[%s888_s30 + $0x1] sm:$0x1] %v123_v1 }
  0x2e   : > { %149 = vsyncadd [#allocation2 + $0x1], 16  ;;  %s150_s8 = sadd.s32 2, %s880_s24 }
  0x2f   : > { %s151_s9 = sld [smem:[#allocation4 + %s150_s8]] }
  0x35   : > { %s152_s12 = scalar_lea.vmem %s975_s1, %s151_s9 }
  0x36   : > { %v172_v2 = vld [vmem:[%s152_s12] sm:$0x1] }
  0x37   : > { %680 = vst [vmem:[%s888_s30 + $0x2] sm:$0x1] %v172_v2 }
  0x38   : > { %198 = vsyncadd [#allocation2 + $0x2], 16  ;;  %s199_s13 = sadd.s32 3, %s880_s24 }
  0x39   : > { %s200_s16 = sld [smem:[#allocation4 + %s199_s13]] }
  0x3f   : > { %s201_s25 = scalar_lea.vmem %s975_s1, %s200_s16 }
  0x40   : > { %v221_v3 = vld [vmem:[%s201_s25] sm:$0x1] }
  0x41   : > { %682 = vst [vmem:[%s888_s30 + $0x3] sm:$0x1] %v221_v3 }
  0x42   : > { %247 = vsyncadd [#allocation2 + $0x3], 16  ;;  %s248_s26 = sadd.s32 4, %s880_s24 }
  0x43   : > { %s249_s27 = sld [smem:[#allocation4 + %s248_s26]] }
  0x49   : > { %s250_s3 = scalar_lea.vmem %s975_s1, %s249_s27 }
  0x4a   : > { %v270_v4 = vld [vmem:[%s250_s3] sm:$0x1] }
  0x4b   : > { %684 = vst [vmem:[%s888_s30 + $0x4] sm:$0x1] %v270_v4 }
  0x4c   : > { %296 = vsyncadd [#allocation2 + $0x4], 16  ;;  %s297_s4 = sadd.s32 5, %s880_s24 }
  0x4d   : > { %s298_s5 = sld [smem:[#allocation4 + %s297_s4]] }
  0x53   : > { %s299_s8 = scalar_lea.vmem %s975_s1, %s298_s5 }
  0x54   : > { %v319_v5 = vld [vmem:[%s299_s8] sm:$0x1] }
  0x55   : > { %686 = vst [vmem:[%s888_s30 + $0x5] sm:$0x1] %v319_v5 }
  0x56   : > { %345 = vsyncadd [#allocation2 + $0x5], 16  ;;  %s346_s9 = sadd.s32 6, %s880_s24 }
  0x57   : > { %s347_s10 = sld [smem:[#allocation4 + %s346_s9]] }
  0x5d   : > { %s348_s13 = scalar_lea.vmem %s975_s1, %s347_s10 }
  0x5e   : > { %v368_v6 = vld [vmem:[%s348_s13] sm:$0x1] }
  0x5f   : > { %688 = vst [vmem:[%s888_s30 + $0x6] sm:$0x1] %v368_v6 }
  0x60   : > { %394 = vsyncadd [#allocation2 + $0x6], 16  ;;  %s395_s16 = sadd.s32 7, %s880_s24 }
  0x61   : > { %s396_s18 = sld [smem:[#allocation4 + %s395_s16]] }
  0x67   : > { %s397_s26 = scalar_lea.vmem %s975_s1, %s396_s18 }
  0x68   : > { %v417_v7 = vld [vmem:[%s397_s26] sm:$0x1] }
  0x69   : > { %690 = vst [vmem:[%s888_s30 + $0x7] sm:$0x1] %v417_v7 }
  0x6a   : > { %443 = vsyncadd [#allocation2 + $0x7], 16 }
  0x6b   : > { %789 = dma.done.wait [#allocation2], 16 }
  0x6c   : > { %790 = vsyncadd [#allocation2], 4294967280 }
  0x6d   : > { %791 = dma.done.wait [#allocation2 + $0x1], 16 }
  0x6e   : > { %792 = vsyncadd [#allocation2 + $0x1], 4294967280 }
  0x6f   : > { %793 = dma.done.wait [#allocation2 + $0x2], 16 }
  0x70   : > { %794 = vsyncadd [#allocation2 + $0x2], 4294967280 }
  0x71   : > { %795 = dma.done.wait [#allocation2 + $0x3], 16 }
  0x72   : > { %796 = vsyncadd [#allocation2 + $0x3], 4294967280 }
  0x73   : > { %797 = dma.done.wait [#allocation2 + $0x4], 16 }
  0x74   : > { %798 = vsyncadd [#allocation2 + $0x4], 4294967280 }
  0x75   : > { %799 = dma.done.wait [#allocation2 + $0x5], 16 }
  0x76   : > { %800 = vsyncadd [#allocation2 + $0x5], 4294967280 }
  0x77   : > { %801 = dma.done.wait [#allocation2 + $0x6], 16 }
  0x78   : > { %802 = vsyncadd [#allocation2 + $0x6], 4294967280 }
  0x79   : > { %803 = dma.done.wait [#allocation2 + $0x7], 16 }
  0x7a   : > { %804 = vsyncadd [#allocation2 + $0x7], 4294967280  ;;  %s692_s24 = sshll.u32 %s819_s0, 7  ;;  %s479_s27 = sshll.u32 %s888_s30, 4  ;;  %v461_v8 = vld [vmem:[%s888_s30] sm:$0xff]  ;;  %vm463_vm0 = vcmask 261120   ;;  %s934_s27 = int_to_ptr.vmem [resolvable:$true] %s479_s27 }
  0x7b   : > { %v462_v9 = vmul.f32 5.656854, %v461_v8  ;;  %s932_s3 = scalar_lea.hbm %s976_s2, %s692_s24  ;;  %s466_s4 = scalar_lea.sflag [#allocation6], %s51_s23 }
  0x7c   : > { %s747_s5 = scalar_lea.vmem %s934_s27, 128  ;;  %s822_s6 = smov [#allocation5]  }
  0x7d   : > { %464 = vst.msk [vmem:[%s888_s30] sm:$0xff] %vm463_vm0, %v462_v9  ;;  %p748_p13 = scmp.ne.s32.totalorder %s934_s27, %s747_s5  ;;  %s751_s7 = sshll.u32 %s822_s6, 4  ;;  %s752_s7 = int_to_ptr.vmem [resolvable:$false] %s751_s7 }
  0x7e   : > { %s753_s8 = scalar_lea.vmem %s752_s7, 256  ;;  %p754_p2 = scmp.lt.s32.totalorder %s934_s27, %s752_s7 }
  0x7f   : > { %p749_p0 = pnand %p748_p13, %p869_p9  ;;  %p755_p3 = scmp.lt.s32.totalorder %s753_s8, %s747_s5 }
  0x81   : > { %p750_p1 = pneg %p749_p0  ;;  %p756_p4 = por %p755_p3, %p754_p2 }
  0x83   : > { %p757_p5 = pnand %p756_p4, %p750_p1 }
  0x85   : > { %760 = shalt.err (!%p757_p5)
}
  0x86   : > { %s761_s23 = scalar_lea.hbm %s932_s3, 128  ;;  %s765_s10 = scalar_lea.hbm %s976_s2, 256 }
  0x87   : > { %p762_p6 = scmp.ne.s32.totalorder %s932_s3, %s761_s23  ;;  %p766_p10 = scmp.lt.u32.totalorder %s932_s3, %s976_s2 }
  0x88   : > { %p767_p12 = scmp.lt.u32.totalorder %s765_s10, %s761_s23  ;;  %p769_p0 = scmp.lt.u32.totalorder %s761_s23, %s932_s3 }
  0x89   : > { %p763_p7 = pnand %p762_p6, %p869_p9 }
  0x8a   : > { %p768_p13 = por %p767_p12, %p766_p10 }
  0x8b   : > { %p764_p8 = pneg %p763_p7 }
  0x8c   : > { %p770_p1 = por %p769_p0, %p768_p13 }
  0x8e   : > { %p771_p2 = pnand %p770_p1, %p764_p8 }
  0x90   : > { %774 = shalt.err (!%p771_p2)
}
  0x91   : > { %703 = dma.vmem_to_hbm [thread:$0]  (%p869_p9), %s934_s27, 128, %s932_s3, %s466_s4  }
  0x92 PF: > { %p709_p3 = scmp.ge.s32.totalorder %s819_s0, 1  ;;  %s491_s13 = sand.u32 1, %s811_s14  }
  0x93   : > { %s492_s16 = scalar_lea.sflag [#allocation6], %s491_s13 }
  0x94   : > { %p706_p4 = pnand %p709_p3, %p873_p11 }
  0x96   : > { %806 = dma.done.wait (!%p706_p4), %s492_s16, 128  }
  0x97   : > { %808 = vsyncadd (!%p706_p4), %s492_s16, 4294967168  ;;  %p18_p5 = scmp.ge.s32.totalorder %s858_s17, 3   ;;  %s979_s14 = smov %s815_s15 }
  0x98   : > { %s980_s15 = smov %s867_s20  ;;  %s981_s0 = smov %s858_s17 }
  0x99   :  { %20 = sbr.rel (!%p18_p5) target bundleno = 18 (0x12), region = 393 }
  0xa0   :  { %497 = vsyncpa [#allocation6], 1 }
  0xa1   :  { %499 = vsyncpa [#allocation6 + $0x1], 1 }
  0xa2   :  { %500 = vsyncmov [#allocation2] }
  0xa5   :  { %s501_s0 = vpop.sfrf %500 }
  0xa6   :  { %p695_p9 = scmp.ne.s32.totalorder %s501_s0, 0 }
  0xa8   :  { %505 = shalt.err (%p695_p9)  }
  0xa9   :  { %507 = vsyncmov [#allocation2 + $0x1] }
  0xac   :  { %s508_s21 = vpop.sfrf %507 }
  0xad   :  { %p696_p11 = scmp.ne.s32.totalorder %s508_s21, 0 }
  0xaf   :  { %512 = shalt.err (%p696_p11)  }
  0xb0   :  { %514 = vsyncmov [#allocation2 + $0x2] }
  0xb3   :  { %s515_s22 = vpop.sfrf %514 }
  0xb4   :  { %p697_p6 = scmp.ne.s32.totalorder %s515_s22, 0 }
  0xb6   :  { %519 = shalt.err (%p697_p6)  }
  0xb7   :  { %521 = vsyncmov [#allocation2 + $0x3] }
  0xba   :  { %s522_s18 = vpop.sfrf %521 }
  0xbb   :  { %p698_p7 = scmp.ne.s32.totalorder %s522_s18, 0 }
  0xbd   :  { %526 = shalt.err (%p698_p7)  }
  0xbe   :  { %528 = vsyncmov [#allocation2 + $0x4] }
  0xc1   :  { %s529_s17 = vpop.sfrf %528 }
  0xc2   :  { %p699_p8 = scmp.ne.s32.totalorder %s529_s17, 0 }
  0xc4   :  { %533 = shalt.err (%p699_p8)  }
  0xc5   :  { %535 = vsyncmov [#allocation2 + $0x5] }
  0xc8   :  { %s536_s1 = vpop.sfrf %535 }
  0xc9   :  { %p700_p10 = scmp.ne.s32.totalorder %s536_s1, 0 }
  0xcb   :  { %540 = shalt.err (%p700_p10)  }
  0xcc   :  { %542 = vsyncmov [#allocation2 + $0x6] }
  0xcf   :  { %s543_s2 = vpop.sfrf %542 }
  0xd0   :  { %p701_p12 = scmp.ne.s32.totalorder %s543_s2, 0 }
  0xd2   :  { %547 = shalt.err (%p701_p12)  }
  0xd3   :  { %549 = vsyncmov [#allocation2 + $0x7] }
  0xd6   :  { %s550_s14 = vpop.sfrf %549 }
  0xd7   :  { %p702_p13 = scmp.ne.s32.totalorder %s550_s14, 0 }
  0xd9   :  { %554 = shalt.err (%p702_p13)  }

</bundles_post_ra>
